<compile_context>
chip_gen: v7x
topology: tpu7x:2x2x1
jax: 0.10.0
libtpu: 0.0.40
codegen_flags: <defaults>
</compile_context>

<pallas_src>
import functools

import jax
import jax.numpy as jnp
from jax.experimental import pallas as pl
from jax.experimental.pallas import tpu as pltpu


def _round_up(v, m):
    return (v + m - 1) // m * m


def channel_attention_kernel(x_ref, w1_ref, b1_ref, w2_ref, b2_ref, o_ref,
                             max_acc, sum_acc, *, hw, hw_tile, n_hw_tiles):
    hw_idx = pl.program_id(1)
    last = n_hw_tiles - 1

    # ---- init lane-wide accumulators at the first HW tile of this B tile ----
    @pl.when(hw_idx == 0)
    def _init():
        max_acc[...] = jnp.full_like(max_acc, -jnp.inf)
        sum_acc[...] = jnp.zeros_like(sum_acc)

    n_chunks = hw_tile // 128
    rem = hw - last * hw_tile  # valid lanes in the LAST tile (trace-time const)

    def accumulate(num_full, partial):
        # Pure elementwise VPU updates over 128-lane chunks; the cross-lane
        # reduce happens once, at finalize.
        m = max_acc[...]
        s = sum_acc[...]
        for j in range(num_full):
            chunk = x_ref[:, :, pl.ds(j * 128, 128)]
            m = jnp.maximum(m, chunk)
            s = s + chunk
        if partial > 0:
            chunk = x_ref[:, :, pl.ds(num_full * 128, 128)]
            lane = jax.lax.broadcasted_iota(jnp.int32, chunk.shape, 2)
            valid = lane < partial
            m = jnp.maximum(m, jnp.where(valid, chunk, -jnp.inf))
            s = s + jnp.where(valid, chunk, 0.0)
        max_acc[...] = m
        sum_acc[...] = s

    if rem == hw_tile:
        # No ragged tile: one unmasked path for every HW step.
        accumulate(n_chunks, 0)
    else:
        # Masking only ever runs on the last HW tile; all other tiles take the
        # fully unmasked path (no per-step iota / compare / select).
        @pl.when(hw_idx != last)
        def _full_tiles():
            accumulate(n_chunks, 0)

        @pl.when(hw_idx == last)
        def _ragged_tile():
            accumulate(rem // 128, rem % 128)

    # ---- finalize: single cross-lane reduce + MLP + sigmoid per B tile ------
    @pl.when(hw_idx == last)
    def _finalize():
        max_pooled = jnp.max(max_acc[...], axis=-1)                  # (BT, C)
        avg_pooled = jnp.sum(sum_acc[...], axis=-1) * (1.0 / float(hw))

        # Fuse the two MLP passes into one (2*B_TILE, C) matmul pair.
        pooled = jnp.concatenate([max_pooled, avg_pooled], axis=0)
        h = jnp.dot(pooled, w1_ref[...],
                    preferred_element_type=jnp.float32) + b1_ref[...]
        h = jnp.maximum(h, 0.0)
        att = jnp.dot(h, w2_ref[...],
                      preferred_element_type=jnp.float32) + b2_ref[...]

        bt = max_acc.shape[0]
        gate = jax.nn.sigmoid(att[:bt, :] + att[bt:, :])             # (BT, C)
        o_ref[...] = gate[:, None, :]                                # (BT, 1, C)


def channel_attention(x, w1, b1, w2, b2):
    """x: (B, C, H, W) f32. w1: (hidden, C), b1: (hidden,), w2: (C, hidden),
    b2: (C,) (PyTorch Linear layout). Returns (B, C, 1, 1) attention map."""
    B, C, H, W = x.shape
    hidden = w1.shape[0]
    HW = H * W
    x_flat = x.reshape(B, C, HW)

    # Present weights as (in, out) so the kernel does plain row-major matmuls.
    w1_t = jnp.transpose(w1)          # (C, hidden)
    w2_t = jnp.transpose(w2)          # (hidden, C)
    b1_2d = b1.reshape(1, hidden)
    b2_2d = b2.reshape(1, C)

    # ---- tile sizing --------------------------------------------------------
    C_pad = _round_up(C, 8)           # sublane padding of the C axis
    HW_pad = _round_up(HW, 128)
    X_BUFFER_BYTES = 8 * 1024 * 1024  # per x buffer (x2 for double buffering)

    # B tile: >= 2 B-tiles when B >= 2 so v7x megacore splits the grid; up to
    # 32 rows for large B (bigger finalize matmul M, fewer epilogues).
    B_TILE = max(1, min(32, B // 2)) if B >= 2 else 1
    # Shrink B_TILE first when C is large so the HW tile keeps >= 512 lanes.
    while B_TILE > 1 and B_TILE * C_pad * 512 * 4 > X_BUFFER_BYTES:
        B_TILE = max(1, B_TILE // 2)

    # HW tile: multiple of 128, budget-capped, and capped at 8192 lanes (keeps
    # the unrolled chunk loop <= 64 iterations; 0.35 us/step overhead is
    # negligible at this size).
    max_hw_tile = max(128, (X_BUFFER_BYTES // (B_TILE * C_pad * 4)) // 128 * 128)
    HW_TILE = int(min(HW_pad, max_hw_tile, 8192))

    n_b = pl.cdiv(B, B_TILE)
    n_hw = pl.cdiv(HW, HW_TILE)
    grid = (n_b, n_hw)

    # ---- VMEM budget (sublane/lane padding included) -> explicit limit ------
    hid_lane = _round_up(hidden, 128)
    C_lane = _round_up(C, 128)
    x_buf_bytes = B_TILE * C_pad * HW_TILE * 4
    w_bytes = (C_pad * hid_lane + _round_up(hidden, 8) * C_lane
               + 8 * hid_lane + 8 * C_lane) * 4
    acc_bytes = 2 * B_TILE * C_pad * 128 * 4
    out_bytes = B_TILE * 8 * C_lane * 4
    vmem_need = 2 * x_buf_bytes + 2 * w_bytes + acc_bytes + 2 * out_bytes
    # >= 32 MiB (covers v5e's 16 MiB scoped default), <= 48 MiB (v7x headroom).
    vmem_limit = int(min(48 * 2**20, max(32 * 2**20, int(vmem_need * 1.25))))

    kernel = functools.partial(channel_attention_kernel, hw=HW, hw_tile=HW_TILE,
                               n_hw_tiles=int(n_hw))

    cost = pl.CostEstimate(
        flops=2 * B * C * HW + 8 * B * C * hidden,
        transcendentals=B * C,
        bytes_accessed=4 * (B * C * HW + 2 * C * hidden + hidden + C + B * C),
    )

    out = pl.pallas_call(
        kernel,
        out_shape=jax.ShapeDtypeStruct((B, 1, C), jnp.float32),
        grid=grid,
        in_specs=[
            # Activation: streamed over the (B, HW) grid, full-C blocks.
            pl.BlockSpec((B_TILE, C, HW_TILE), lambda b, h: (b, 0, h)),
            # Weights / biases: constant index_map -> DMA'd once, resident.
            pl.BlockSpec((C, hidden), lambda b, h: (0, 0)),
            pl.BlockSpec((1, hidden), lambda b, h: (0, 0)),
            pl.BlockSpec((hidden, C), lambda b, h: (0, 0)),
            pl.BlockSpec((1, C), lambda b, h: (0, 0)),
        ],
        # Output block index independent of the HW axis -> resident across the
        # reduction; single store at the final HW step.  (B_TILE, 1, C): the
        # last two block dims equal the full array dims, so any B_TILE works.
        out_specs=pl.BlockSpec((B_TILE, 1, C), lambda b, h: (b, 0, 0)),
        scratch_shapes=[
            pltpu.VMEM((B_TILE, C, 128), jnp.float32),   # lane-wide running max
            pltpu.VMEM((B_TILE, C, 128), jnp.float32),   # lane-wide running sum
        ],
        compiler_params=pltpu.CompilerParams(
            dimension_semantics=("parallel", "arbitrary"),
            vmem_limit_bytes=vmem_limit),
        cost_estimate=cost,
    )(x_flat, w1_t, b1_2d, w2_t, b2_2d)

    return out.reshape(B, C, 1, 1)


if __name__ == "__main__":
    # Small shapes consistent with the module: B=2, C=4, H=W=16, reduction_ratio=2.
    B, C, H, W = 2, 4, 16, 16
    reduction_ratio = 2
    hidden = int(C // reduction_ratio)

    key = jax.random.PRNGKey(0)
    kx, kw1, kb1, kw2, kb2 = jax.random.split(key, 5)

    x = jax.random.normal(kx, (B, C, H, W), dtype=jnp.float32)

    # PyTorch Linear shapes: weight (out, in), bias (out,).
    bound1 = 1.0 / (C ** 0.5)
    w1 = jax.random.uniform(kw1, (hidden, C), minval=-bound1, maxval=bound1,
                            dtype=jnp.float32)
    b1 = jax.random.uniform(kb1, (hidden,), minval=-bound1, maxval=bound1,
                            dtype=jnp.float32)
    bound2 = 1.0 / (hidden ** 0.5)
    w2 = jax.random.uniform(kw2, (C, hidden), minval=-bound2, maxval=bound2,
                            dtype=jnp.float32)
    b2 = jax.random.uniform(kb2, (C,), minval=-bound2, maxval=bound2,
                            dtype=jnp.float32)

    out = channel_attention(x, w1, b1, w2, b2)
    jax.block_until_ready(out)

    # Pure-JAX reference of the same semantics.
    max_p = jnp.max(x.reshape(B, C, -1), axis=-1)
    avg_p = jnp.mean(x.reshape(B, C, -1), axis=-1)

    def ref_mlp(v):
        h = jnp.maximum(v @ w1.T + b1, 0.0)
        return h @ w2.T + b2

    ref = jax.nn.sigmoid(ref_mlp(max_p) + ref_mlp(avg_p)).reshape(B, C, 1, 1)
    assert out.shape == (B, C, 1, 1)
    assert jnp.allclose(out, ref, atol=1e-5, rtol=1e-5)

    print("KERNEL_OK")
</pallas_src>

<mosaic_0001>
module attributes {stable_mosaic.version = 11 : i64} {
  func.func @channel_attention_kernel(%arg0: i32, %arg1: i32, %arg2: memref<1x4x256xf32, #tpu.memory_space<vmem>>, %arg3: memref<4x2xf32, #tpu.memory_space<vmem>>, %arg4: memref<1x2xf32, #tpu.memory_space<vmem>>, %arg5: memref<2x4xf32, #tpu.memory_space<vmem>>, %arg6: memref<1x4xf32, #tpu.memory_space<vmem>>, %arg7: memref<1x1x4xf32, #tpu.memory_space<vmem>>, %arg8: memref<1x4x128xf32, #tpu.memory_space<vmem>>, %arg9: memref<1x4x128xf32, #tpu.memory_space<vmem>>) attributes {dimension_semantics = [#tpu.dimension_semantics<parallel>, #tpu.dimension_semantics<arbitrary>], iteration_bounds = array<i64: 2, 1>, scalar_prefetch = 0 : i64, scratch_operands = 2 : i64, tpu.core_type = #tpu.core_type<tc>, window_params = [{transform_indices = @transform_0, window_bounds = array<i64: 1, 4, 256>}, {pipeline_mode = #tpu.pipeline_mode<synchronous>, transform_indices = @transform_1, window_bounds = array<i64: 4, 2>}, {pipeline_mode = #tpu.pipeline_mode<synchronous>, transform_indices = @transform_2, window_bounds = array<i64: 1, 2>}, {pipeline_mode = #tpu.pipeline_mode<synchronous>, transform_indices = @transform_3, window_bounds = array<i64: 2, 4>}, {pipeline_mode = #tpu.pipeline_mode<synchronous>, transform_indices = @transform_4, window_bounds = array<i64: 1, 4>}, {transform_indices = @transform_5, window_bounds = array<i64: 1, 1, 4>}]} {
    %c0_i32 = arith.constant 0 : i32
    %0 = arith.cmpi eq, %arg1, %c0_i32 : i32
    %1 = arith.extui %0 : i1 to i32
    %c0_i32_0 = arith.constant 0 : i32
    %2 = arith.cmpi ne, %1, %c0_i32_0 : i32
    scf.if %2 {
      %cst = arith.constant 0xFF800000 : f32
      %16 = vector.broadcast %cst : f32 to vector<1x4x128xf32>
      %c0_19 = arith.constant 0 : index
      %c0_20 = arith.constant 0 : index
      %c0_21 = arith.constant 0 : index
      %17 = vector.load %arg8[%c0_19, %c0_20, %c0_21] : memref<1x4x128xf32, #tpu.memory_space<vmem>>, vector<1x4x128xf32>
      tpu.vector_store %arg8[%c0_19, %c0_20, %c0_21], %16 {strides = array<i32>} : memref<1x4x128xf32, #tpu.memory_space<vmem>>, vector<1x4x128xf32>,
      %cst_22 = arith.constant 0.000000e+00 : f32
      %18 = vector.broadcast %cst_22 : f32 to vector<1x4x128xf32>
      %c0_23 = arith.constant 0 : index
      %c0_24 = arith.constant 0 : index
      %c0_25 = arith.constant 0 : index
      %19 = vector.load %arg9[%c0_23, %c0_24, %c0_25] : memref<1x4x128xf32, #tpu.memory_space<vmem>>, vector<1x4x128xf32>
      tpu.vector_store %arg9[%c0_23, %c0_24, %c0_25], %18 {strides = array<i32>} : memref<1x4x128xf32, #tpu.memory_space<vmem>>, vector<1x4x128xf32>,
    } else {
    }
    %c0 = arith.constant 0 : index
    %c0_1 = arith.constant 0 : index
    %c0_2 = arith.constant 0 : index
    %3 = vector.load %arg8[%c0, %c0_1, %c0_2] : memref<1x4x128xf32, #tpu.memory_space<vmem>>, vector<1x4x128xf32>
    %c0_3 = arith.constant 0 : index
    %c0_4 = arith.constant 0 : index
    %c0_5 = arith.constant 0 : index
    %4 = vector.load %arg9[%c0_3, %c0_4, %c0_5] : memref<1x4x128xf32, #tpu.memory_space<vmem>>, vector<1x4x128xf32>
    %c0_6 = arith.constant 0 : index
    %c0_7 = arith.constant 0 : index
    %c0_8 = arith.constant 0 : index
    %5 = vector.load %arg2[%c0_6, %c0_7, %c0_8] : memref<1x4x256xf32, #tpu.memory_space<vmem>>, vector<1x4x128xf32>
    %6 = arith.maximumf %3, %5 : vector<1x4x128xf32>
    %7 = arith.addf %4, %5 : vector<1x4x128xf32>
    %c0_9 = arith.constant 0 : index
    %c0_10 = arith.constant 0 : index
    %c128 = arith.constant 128 : index
    %8 = vector.load %arg2[%c0_9, %c0_10, %c128] : memref<1x4x256xf32, #tpu.memory_space<vmem>>, vector<1x4x128xf32>
    %9 = arith.maximumf %6, %8 : vector<1x4x128xf32>
    %10 = arith.addf %7, %8 : vector<1x4x128xf32>
    %c0_11 = arith.constant 0 : index
    %c0_12 = arith.constant 0 : index
    %c0_13 = arith.constant 0 : index
    %11 = vector.load %arg8[%c0_11, %c0_12, %c0_13] : memref<1x4x128xf32, #tpu.memory_space<vmem>>, vector<1x4x128xf32>
    tpu.vector_store %arg8[%c0_11, %c0_12, %c0_13], %9 {strides = array<i32>} : memref<1x4x128xf32, #tpu.memory_space<vmem>>, vector<1x4x128xf32>,
    %c0_14 = arith.constant 0 : index
    %c0_15 = arith.constant 0 : index
    %c0_16 = arith.constant 0 : index
    %12 = vector.load %arg9[%c0_14, %c0_15, %c0_16] : memref<1x4x128xf32, #tpu.memory_space<vmem>>, vector<1x4x128xf32>
    tpu.vector_store %arg9[%c0_14, %c0_15, %c0_16], %10 {strides = array<i32>} : memref<1x4x128xf32, #tpu.memory_space<vmem>>, vector<1x4x128xf32>,
    %c0_i32_17 = arith.constant 0 : i32
    %13 = arith.cmpi eq, %arg1, %c0_i32_17 : i32
    %14 = arith.extui %13 : i1 to i32
    %c0_i32_18 = arith.constant 0 : i32
    %15 = arith.cmpi ne, %14, %c0_i32_18 : i32
    scf.if %15 {
      %c0_19 = arith.constant 0 : index
      %c0_20 = arith.constant 0 : index
      %c0_21 = arith.constant 0 : index
      %16 = vector.load %arg8[%c0_19, %c0_20, %c0_21] : memref<1x4x128xf32, #tpu.memory_space<vmem>>, vector<1x4x128xf32>
      %cst = arith.constant dense<0xFF800000> : vector<1x4xf32>
      %17 = vector.multi_reduction <maximumf>, %16, %cst [2] : vector<1x4x128xf32> to vector<1x4xf32>
      %c0_22 = arith.constant 0 : index
      %c0_23 = arith.constant 0 : index
      %c0_24 = arith.constant 0 : index
      %18 = vector.load %arg9[%c0_22, %c0_23, %c0_24] : memref<1x4x128xf32, #tpu.memory_space<vmem>>, vector<1x4x128xf32>
      %cst_25 = arith.constant dense<0.000000e+00> : vector<1x4xf32>
      %19 = vector.multi_reduction <add>, %18, %cst_25 [2] : vector<1x4x128xf32> to vector<1x4xf32>
      %cst_26 = arith.constant 3.906250e-03 : f32
      %20 = vector.broadcast %cst_26 : f32 to vector<1x4xf32>
      %21 = arith.mulf %19, %20 : vector<1x4xf32>
      %22 = tpu.concatenate %17, %21 in 0 : vector<1x4xf32>, vector<1x4xf32> -> vector<2x4xf32>
      %c0_27 = arith.constant 0 : index
      %c0_28 = arith.constant 0 : index
      %23 = vector.load %arg3[%c0_27, %c0_28] : memref<4x2xf32, #tpu.memory_space<vmem>>, vector<4x2xf32>
      %cst_29 = arith.constant dense<0.000000e+00> : vector<2x2xf32>
      %24 = tpu.matmul %22, %23, %cst_29 {dimension_numbers = #tpu.dot_dimension_numbers<[1], [0], [0], [1], [0, 0, 1, 1], [], []>} : vector<2x4xf32>, vector<4x2xf32>, vector<2x2xf32> -> vector<2x2xf32>
      %c0_30 = arith.constant 0 : index
      %c0_31 = arith.constant 0 : index
      %25 = vector.load %arg4[%c0_30, %c0_31] : memref<1x2xf32, #tpu.memory_space<vmem>>, vector<1x2xf32>
      %26 = vector.broadcast %25 : vector<1x2xf32> to vector<2x2xf32>
      %27 = arith.addf %24, %26 : vector<2x2xf32>
      %cst_32 = arith.constant 0.000000e+00 : f32
      %28 = vector.broadcast %cst_32 : f32 to vector<2x2xf32>
      %29 = arith.maximumf %27, %28 : vector<2x2xf32>
      %c0_33 = arith.constant 0 : index
      %c0_34 = arith.constant 0 : index
      %30 = vector.load %arg5[%c0_33, %c0_34] : memref<2x4xf32, #tpu.memory_space<vmem>>, vector<2x4xf32>
      %cst_35 = arith.constant dense<0.000000e+00> : vector<2x4xf32>
      %31 = tpu.matmul %29, %30, %cst_35 {dimension_numbers = #tpu.dot_dimension_numbers<[1], [0], [0], [1], [0, 0, 1, 1], [], []>} : vector<2x2xf32>, vector<2x4xf32>, vector<2x4xf32> -> vector<2x4xf32>
      %c0_36 = arith.constant 0 : index
      %c0_37 = arith.constant 0 : index
      %32 = vector.load %arg6[%c0_36, %c0_37] : memref<1x4xf32, #tpu.memory_space<vmem>>, vector<1x4xf32>
      %33 = vector.broadcast %32 : vector<1x4xf32> to vector<2x4xf32>
      %34 = arith.addf %31, %33 : vector<2x4xf32>
      %35 = vector.extract_strided_slice %34 {offsets = [0, 0], sizes = [1, 4], strides = [1, 1]} : vector<2x4xf32> to vector<1x4xf32>
      %36 = vector.extract_strided_slice %34 {offsets = [1, 0], sizes = [1, 4], strides = [1, 1]} : vector<2x4xf32> to vector<1x4xf32>
      %37 = arith.addf %35, %36 : vector<1x4xf32>
      %38 = arith.negf %37 : vector<1x4xf32>
      %39 = math.exp %38 : vector<1x4xf32>
      %cst_38 = arith.constant 1.000000e+00 : f32
      %40 = vector.broadcast %cst_38 : f32 to vector<1x4xf32>
      %41 = arith.addf %40, %39 : vector<1x4xf32>
      %42 = arith.divf %40, %41 : vector<1x4xf32>
      %43 = vector.shape_cast %42 : vector<1x4xf32> to vector<1x1x4xf32>
      %c0_39 = arith.constant 0 : index
      %c0_40 = arith.constant 0 : index
      %c0_41 = arith.constant 0 : index
      %44 = vector.load %arg7[%c0_39, %c0_40, %c0_41] : memref<1x1x4xf32, #tpu.memory_space<vmem>>, vector<1x1x4xf32>
      tpu.vector_store %arg7[%c0_39, %c0_40, %c0_41], %43 {strides = array<i32>} : memref<1x1x4xf32, #tpu.memory_space<vmem>>, vector<1x1x4xf32>,
    } else {
    }
    return
  }
  func.func @transform_0(%arg0: i32, %arg1: i32) -> (i32, i32, i32) {
    %c0_i32 = arith.constant 0 : i32
    %c0_i32_0 = arith.constant 0 : i32
    return %arg0, %c0_i32, %arg1 : i32, i32, i32
  }
  func.func @transform_1(%arg0: i32, %arg1: i32) -> (i32, i32) {
    %c0_i32 = arith.constant 0 : i32
    %c0_i32_0 = arith.constant 0 : i32
    %c0_i32_1 = arith.constant 0 : i32
    return %c0_i32, %c0_i32_0 : i32, i32
  }
  func.func @transform_2(%arg0: i32, %arg1: i32) -> (i32, i32) {
    %c0_i32 = arith.constant 0 : i32
    %c0_i32_0 = arith.constant 0 : i32
    %c0_i32_1 = arith.constant 0 : i32
    return %c0_i32, %c0_i32_0 : i32, i32
  }
  func.func @transform_3(%arg0: i32, %arg1: i32) -> (i32, i32) {
    %c0_i32 = arith.constant 0 : i32
    %c0_i32_0 = arith.constant 0 : i32
    %c0_i32_1 = arith.constant 0 : i32
    return %c0_i32, %c0_i32_0 : i32, i32
  }
  func.func @transform_4(%arg0: i32, %arg1: i32) -> (i32, i32) {
    %c0_i32 = arith.constant 0 : i32
    %c0_i32_0 = arith.constant 0 : i32
    %c0_i32_1 = arith.constant 0 : i32
    return %c0_i32, %c0_i32_0 : i32, i32
  }
  func.func @transform_5(%arg0: i32, %arg1: i32) -> (i32, i32, i32) {
    %c0_i32 = arith.constant 0 : i32
    %c0_i32_0 = arith.constant 0 : i32
    %c0_i32_1 = arith.constant 0 : i32
    return %arg0, %c0_i32, %c0_i32_0 : i32, i32, i32
  }
}

</mosaic_0001>

<bundles_post_ra>
// kernel: tpu_custom_call.1
= control target key start
LH: loop header
LB: loop body
LE: loop exit
PB: predicated region body
PF: predicated region fallthrough
CT: control target
= control target key end

     0   :  { %10 = vsyncpa [#allocation5], 0  ;;  %s1013_s0 = inlined_call_operand.hbm [shape: f32[2,4,256], index: 0, kind: input, shape index: {}]   ;;  %s1014_s1 = inlined_call_operand.vmem [shape: f32[4,2], index: 1, kind: input, shape index: {}]   ;;  %s1015_s2 = inlined_call_operand.vmem [shape: f32[1,2], index: 2, kind: input, shape index: {}]   ;;  %s1016_s3 = inlined_call_operand.vmem [shape: f32[2,4], index: 3, kind: input, shape index: {}]   ;;  %s1017_s4 = inlined_call_operand.vmem [shape: f32[1,4], index: 4, kind: input, shape index: {}]   ;;  %s1018_s5 = inlined_call_operand.hbm [shape: f32[2,1,4], index: 5, kind: output, shape index: {}]  }
   0x1   :  { %12 = vsyncpa [#allocation5 + $0x1], 0 }
   0x2   :  { %13 = vsyncpa [#allocation6], 0 }
   0x3   :  { %15 = vsyncpa [#allocation6 + $0x1], 0  ;;  %s828_s18 = smov 0   ;;  %s830_s19 = smov 0  }
   0x4   :  { %s832_s20 = smov 0   ;;  %s834_s21 = smov 0  }
   0x5   :  { %s836_s22 = smov 0   ;;  %s838_s23 = smov 0  }
   0x6 LB: > { %s576_s24 = sadd.s32 4294967295, %s791_s23   ;;  %s577_s25 = sadd.s32 4294967294, %s791_s23   ;;  %s791_s23 = sphi %s838_s23, %s21_s23   ;;  %s787_s22 = sphi %s836_s22, %s1034_s22   ;;  %s783_s21 = sphi %s834_s21, %s1033_s21   ;;  %s779_s20 = sphi %s832_s20, %s1032_s20   ;;  %s775_s19 = sphi %s830_s19, %s1031_s19   ;;  %s771_s18 = sphi %s828_s18, %s1030_s18  }
   0x7   : > { %s33_s26 = sadd.s32 1, %s787_s22  ;;  %s42_s27 = sadd.s32 1, %s779_s20 }
   0x8   : > { %p35_p0 = scmp.ge.s32.totalorder %s33_s26, 2  ;;  %p49_p1 = scmp.ne.s32.totalorder %s779_s20, %s775_s19 }
   0x9   : > { %p50_p2 = scmp.eq.s32.totalorder %s791_s23, 0  ;;  %p55_p3 = scmp.ne.s32.totalorder %s775_s19, %s771_s18 }
   0xa   : > { %s1036_s26 = smov (%p35_p0, %s33_s26), 0  ;;  %p56_p5 = scmp.eq.s32.totalorder %s576_s24, 0 }
   0xb   : > { %p869_p4 = por %p50_p2, %p49_p1  ;;  %s37_s29 = ssub.s32 %s787_s22, %s1036_s26 }
   0xc   : > { %p163_p6 = scmp.eq.s32.totalorder %s576_s24, 1  ;;  %p40_p7 = scmp.eq.s32.totalorder %s37_s29, 0 }
   0xd   : > { %p875_p8 = por %p56_p5, %p55_p3  ;;  %p169_p10 = scmp.eq.s32.totalorder %s577_s25, 1 }
   0xe   : > { %p879_p9 = por %p163_p6, %p49_p1  ;;  %p622_p13 = scmp.lt.s32.totalorder %s791_s23, 2 }
   0xf   : > { %s884_s7 = scalar_select %p40_p7, %s779_s20, %s42_s27  }
  0x10   : > { %s1022_s6 = scalar_select %p879_p9, 1, 0 }
  0x11   : > { %p886_p11 = por %p169_p10, %p55_p3  ;;  %s201_s9 = sand.u32 1, %s779_s20  }
  0x12   : > { %s580_s10 = sshll.u32 %s201_s9, 3  ;;  %s595_s11 = sshll.u32 %s787_s22, 7 }
  0x13   : > { %s1023_s8 = scalar_select %p886_p11, 1, 0 }
  0x14   : > { %s897_s14 = scalar_lea.hbm %s1013_s0, %s595_s11  ;;  %s205_s15 = scalar_lea.vmem [#allocation4], %s580_s10 }
  0x15   : > { %s215_s16 = sshll.u32 %s205_s15, 4  ;;  %p903_p0 = pnand %p622_p13, %p869_p4  ;;  %s899_s16 = int_to_ptr.vmem [resolvable:$true] %s215_s16 }
  0x16   : > { %s202_s24 = scalar_lea.sflag [#allocation5], %s201_s9  ;;  %s679_s25 = scalar_lea.hbm %s897_s14, 128 }
  0x17   : > { %p680_p3 = scmp.ne.s32.totalorder %s897_s14, %s679_s25  ;;  %p681_p5 = pneg %p903_p0 }
  0x18   : > { %s684_s28 = scalar_lea.hbm %s1013_s0, 256  ;;  %p685_p4 = scmp.lt.u32.totalorder %s897_s14, %s1013_s0 }
  0x19   : > { %p682_p6 = pnand %p681_p5, %p680_p3  ;;  %p686_p10 = scmp.lt.u32.totalorder %s684_s28, %s679_s25 }
  0x1a   : > { %p688_p12 = scmp.lt.u32.totalorder %s679_s25, %s897_s14 }
  0x1b   : > { %p683_p7 = pneg %p682_p6  ;;  %p687_p13 = por %p686_p10, %p685_p4 }
  0x1d   : > { %p689_p1 = por %p688_p12, %p687_p13 }
  0x1f   : > { %p690_p2 = pnand %p689_p1, %p683_p7 }
  0x21   : > { %693 = shalt.err (!%p690_p2)
}
  0x22   : > { %s694_s9 = scalar_lea.vmem %s899_s16, 128  ;;  %s793_s12 = smov [#allocation4]  }
  0x23   : > { %p695_p3 = scmp.ne.s32.totalorder %s899_s16, %s694_s9  ;;  %s699_s13 = sshll.u32 %s793_s12, 4  ;;  %s700_s13 = int_to_ptr.vmem [resolvable:$false] %s699_s13 }
  0x24   : > { %s701_s15 = scalar_lea.vmem %s700_s13, 256  ;;  %p702_p9 = scmp.lt.s32.totalorder %s899_s16, %s700_s13 }
  0x25   : > { %p697_p6 = pnand %p695_p3, %p681_p5  ;;  %p703_p4 = scmp.lt.s32.totalorder %s701_s15, %s694_s9 }
  0x27   : > { %p698_p11 = pneg %p697_p6  ;;  %p704_p10 = por %p703_p4, %p702_p9 }
  0x29   : > { %p705_p12 = pnand %p704_p10, %p698_p11 }
  0x2b   : > { %708 = shalt.err (!%p705_p12)
}
  0x2c   : > { %617 = dma.hbm_to_vmem [thread:$0]  (!%p903_p0), %s897_s14, 128, %s899_s16, %s202_s24  }
  0x2d   : > { %p1025_p1 = scmp.lt.s32.totalorder %s791_s23, 3  ;;  %p1026_p2 = scmp.ge.s32.totalorder %s791_s23, 1 }
  0x2f   : > { %p221_p5 = pnand %p1026_p2, %p1025_p1 }
  0x30   : > { %s939_s25 = sand.u32 (!%p221_p5), 1, %s775_s19  }
  0x31   : > { %224 = sbr.rel (%p221_p5) target bundleno = 702 (0x2be), region = 40  ;;  %s584_s27 = sshll.u32 (!%p221_p5), %s939_s25, 3 }
  0x32   : > { %s227_s29 = scalar_lea.sflag (!%p221_p5), [#allocation5], %s939_s25  ;;  %s230_s28 = scalar_lea.vmem (!%p221_p5), [#allocation4], %s584_s27 }
  0x38   : > { %762 = dma.done.wait (%p875_p8), %s227_s29, 128  }
  0x39   : > { %764 = vsyncadd (%p875_p8), %s227_s29, 4294967168  ;;  %v794_v0 = vmov 0.0   ;;  %v795_v1 = vmov -inf   ;;  %v265_v2 = vld [vmem:[%s230_s28] sm:$0xf]  ;;  %vm277_vm0 = vcmask 1043456   ;;  %v287_v15 = vlaneseq }
  0x3a   : > { %262 = vst [vmem:[#allocation3] sm:$0xf] %v794_v0  ;;  %261 = vst [vmem:[#allocation2] sm:$0xf] %v795_v1  ;;  %600 = vmatprep.subr.mxu0 %v794_v0  ;;  %605 = vmatprep.subr.mxu1 %v794_v0  ;;  %v268_v4 = vld [vmem:[%s230_s28 + $0x4] sm:$0xf] }
  0x3b   : > { %v302_v14 = vld [vmem:[%s1014_s1] sm:$0xf]  ;;  %vm796_vm1 = vmmov 0   ;;  %v288_v16 = vand.u32 127, %v287_v15  ;;  %v290_v17 = vshrl.u32 %v287_v15, 7  ;;  %vm300_vm2 = vcmask 1040384  }
  0x3c   : > { %601 = vmatpush3.msk.msra.mxu0 %vm277_vm0, %v302_v14  ;;  %602 = vmatprep.mubr.msk.f32.mxu0 %vm796_vm1, %v794_v0  ;;  %vm310_vm3 = vcmask 31744   ;;  %v388_v25 = vld [vmem:[%s1016_s3] sm:$0x3]  ;;  %vm400_vm4 = vcmask 1041408   ;;  %vm396_vm5 = vcmask 15360   ;;  %s592_s12 = sshll.u32 %s783_s21, 4 }
  0x3d   : > { %607 = vmatprep.mubr.msk.f32.mxu1 %vm796_vm1, %v794_v0  ;;  %v291_v19 = vsub.s32 %v288_v16, %v290_v17  ;;  %606 = vmatpush3.msk.msra.mxu1 %vm400_vm4, %v388_v25  ;;  %v585_v26 = vld [vmem:[%s1015_s2] ss:$0 sm:$0xff]  ;;  %s255_s13 = scalar_lea.vmem [#allocation7], %s939_s25  ;;  %vm484_vm6 = vcmask 24576   ;;  %s964_s28 = scalar_lea.hbm %s1018_s5, %s592_s12 }
  0x3e   : > { %v588_v31 = vld [vmem:[%s1017_s4] ss:$0 sm:$0xff]  ;;  %s499_s15 = sshll.u32 %s255_s13, 4  ;;  %s487_s30 = scalar_lea.sflag [#allocation6], %s939_s25  ;;  %s966_s15 = int_to_ptr.vmem [resolvable:$true] %s499_s15 }
  0x3f   : > { %s709_s14 = scalar_lea.vmem %s966_s15, 16  ;;  %p1027_p9 = scmp.ne.s32.totalorder %s1022_s6, 0 }
  0x40   : > { %p710_p8 = scmp.ne.s32.totalorder %s966_s15, %s709_s14  ;;  %s797_s21 = smov [#allocation7]  }
  0x41   : > { %v264_v3 = vld [vmem:[#allocation3] sm:$0xf]  ;;  %v263_v5 = vld [vmem:[#allocation2] sm:$0xf]  ;;  %s713_s16 = sshll.u32 %s797_s21, 4  ;;  %s714_s16 = int_to_ptr.vmem [resolvable:$false] %s713_s16 }
  0x42   : > { %v267_v6 = vadd.f32 %v265_v2, %v264_v3  ;;  %v266_v7 = vmax.f32 %v263_v5, %v265_v2  ;;  %p711_p11 = pnand %p710_p8, %p1027_p9  ;;  %s715_s17 = scalar_lea.vmem %s714_s16, 32 }
  0x43   : > { %p716_p7 = scmp.lt.s32.totalorder %s966_s15, %s714_s16  ;;  %p717_p13 = scmp.lt.s32.totalorder %s715_s17, %s709_s14 }
  0x44   : > { %v270_v8 = vadd.f32 %v268_v4, %v267_v6  ;;  %v269_v9 = vmax.f32 %v266_v7, %v268_v4  ;;  %p712_p0 = pneg %p711_p11 }
  0x45   : > { %p718_p3 = por %p717_p13, %p716_p7 }
  0x46   : > { %272 = vst [vmem:[#allocation3] sm:$0xf] %v270_v8  ;;  %271 = vst [vmem:[#allocation2] sm:$0xf] %v269_v9 }
  0x47   : > { %p719_p6 = pnand %p718_p3, %p712_p0 }
  0x4d   : > { %v281_v10 = vld [vmem:[#allocation3] sm:$0xf]  ;;  %v276_v11 = vld [vmem:[#allocation2] sm:$0xf] }
  0x4e   : > { %v282_v12 = vsel %vm277_vm0, %v281_v10, 0.0  ;;  %v278_v13 = vsel %vm277_vm0, %v276_v11, -inf }
  0x4f   : > { %283 = vadd.xlane.f32.xlu0 %v282_v12 }
  0x53   : > { %279 = vmax.xlane.f32.xlu0 %v278_v13 }
  0xdc   : > { %v284_v18 = vpop.xlane.xlu0 %283 }
  0xdd   : > { %v285_v20 = vmul.f32 0.00390625, %v284_v18 }
  0xdf   : > { %v298_v22 = vrot.slane %v285_v20, %v291_v19 }
  0xe0   : > { %v280_v21 = vpop.xlane.xlu0 %279 }
  0xe1   : > { %v292_v23 = vrot.slane %v280_v21, %v291_v19 }
  0xe3   : > { %v301_v24 = vsel %vm300_vm2, %v292_v23, %v298_v22 }
  0xe4   : > { %603 = vmatmul.mubr.msk.f32.vlgmr.msra.gmra.mrb[0].mxu0 %vm310_vm3, %v301_v24 }
 0x1b7   : > { %v383_v27 = vpop.f32.mrb[0].mxu0 }
 0x1b8   : > { %v384_v28 = vadd.f32 %v585_v26, %v383_v27  ;;  %v604_v29 = vpop.f32.mrb[1].mxu0 }
 0x1ba   : > { %v387_v30 = vmax.f32 %v384_v28, 0.0 }
 0x1bc   : > { %608 = vmatmul.mubr.msk.f32.vlgmr.msra.gmra.mrb[0].mxu1 %vm396_vm5, %v387_v30 }
 0x28f   : > { %v470_v32 = vpop.f32.mrb[0].mxu1 }
 0x290   : > { %v471_v33 = vadd.f32 %v588_v31, %v470_v32  ;;  %v609_v34 = vpop.f32.mrb[1].mxu1 }
 0x292   : > { %v475_v35 = vrot.slane %v471_v33, 1 }
 0x294   : > { %v477_v36 = vadd.f32 %v475_v35, %v471_v33 }
 0x296   : > { %v591_v37 = vmul.f32 -1.442695, %v477_v36 }
 0x298   : > { %675 = vpow2.f32 %v591_v37 }
 0x2a2   : > { %v676_v38 = vpop.eup %675 }
 0x2a3   : > { %v481_v39 = vadd.f32 1.0, %v676_v38 }
 0x2a5   : > { %677 = vrcp.f32 %v481_v39 }
 0x2af   : > { %v678_v40 = vpop.eup %677 }
 0x2b0   : > { %485 = vst.msk [vmem:[%s255_s13] sm:$0x1] %vm484_vm6, %v678_v40 }
 0x2b1   : > { %722 = shalt.err (!%p719_p6)
}
 0x2b2   : > { %s723_s25 = scalar_lea.hbm %s964_s28, 16  ;;  %s727_s11 = scalar_lea.hbm %s1018_s5, 32 }
 0x2b3   : > { %p724_p4 = scmp.ne.s32.totalorder %s964_s28, %s723_s25  ;;  %p728_p1 = scmp.lt.u32.totalorder %s964_s28, %s1018_s5 }
 0x2b4   : > { %p729_p2 = scmp.lt.u32.totalorder %s727_s11, %s723_s25  ;;  %p731_p8 = scmp.lt.u32.totalorder %s723_s25, %s964_s28 }
 0x2b5   : > { %p725_p10 = pnand %p724_p4, %p1027_p9 }
 0x2b6   : > { %p730_p5 = por %p729_p2, %p728_p1 }
 0x2b7   : > { %p726_p12 = pneg %p725_p10 }
 0x2b8   : > { %p732_p11 = por %p731_p8, %p730_p5 }
 0x2ba   : > { %p733_p0 = pnand %p732_p11, %p726_p12 }
 0x2bc   : > { %736 = shalt.err (!%p733_p0)
}
 0x2bd   : > { %612 = dma.vmem_to_hbm [thread:$0]  (%p1027_p9), %s966_s15, 16, %s964_s28, %s487_s30  }
 0x2be PF: > { %s511_s13 = sand.u32 1, %s771_s18   ;;  %p1028_p7 = scmp.ne.s32.totalorder %s1023_s8, 0 }
 0x2bf   : > { %p1029_p13 = scmp.ge.s32.totalorder %s791_s23, 2  ;;  %s512_s27 = scalar_lea.sflag [#allocation6], %s511_s13 }
 0x2c1   : > { %p619_p3 = pnand %p1029_p13, %p1028_p7 }
 0x2c3   : > { %766 = dma.done.wait (!%p619_p3), %s512_s27, 16  }
 0x2c4   : > { %768 = vsyncadd (!%p619_p3), %s512_s27, 4294967280  ;;  %s21_s23 = sadd.s32 1, %s791_s23   ;;  %s1030_s18 = smov %s775_s19 }
 0x2c5   : > { %p18_p6 = scmp.ge.s32.totalorder %s21_s23, 4   ;;  %s1031_s19 = smov %s779_s20 }
 0x2c6   : > { %s1032_s20 = smov %s884_s7  ;;  %s1033_s21 = smov %s787_s22 }
 0x2c7   : > { %s1034_s22 = smov %s1036_s26  ;;  %20 = sbr.rel (!%p18_p6) target bundleno = 6 (0x6), region = 93 }
 0x2ce   :  { %516 = vsyncpa [#allocation5], 1 }
 0x2cf   :  { %518 = vsyncpa [#allocation5 + $0x1], 1 }
 0x2d0   :  { %519 = vsyncpa [#allocation6], 1 }
 0x2d1   :  { %521 = vsyncpa [#allocation6 + $0x1], 1 }

</bundles_post_ra>
